<compile_context>
chip_gen: v5e
topology: v5e:2x2
jax: 0.10.0
libtpu: 0.0.40
codegen_flags: <defaults>
</compile_context>

<pallas_src>
import jax
import jax.numpy as jnp
from jax.experimental import pallas as pl
from jax.experimental.pallas import tpu as pltpu

LANE = 128


def _round_up(n, m):
    return ((n + m - 1) // m) * m


def critic_kernel(x_ref,
                  w1_ref, b1_ref,
                  w2_ref, b2_ref,
                  w3_ref, b3_ref,
                  w4_ref, b4_ref,
                  out_ref):
    # x / w* are bf16 (MXU-native); accumulate in f32 via preferred_element_type.
    x = x_ref[...]                                                        # (TB, Dp) bf16
    h = jnp.dot(x, w1_ref[...], preferred_element_type=jnp.float32) + b1_ref[...]
    h = jnp.maximum(h, 0.0).astype(jnp.bfloat16)
    h = jnp.dot(h, w2_ref[...], preferred_element_type=jnp.float32) + b2_ref[...]
    h = jnp.maximum(h, 0.0).astype(jnp.bfloat16)
    h = jnp.dot(h, w3_ref[...], preferred_element_type=jnp.float32) + b3_ref[...]
    h = jnp.maximum(h, 0.0)                                               # (TB, Hp) f32

    # q_out: (Hp -> 1) done on the VPU (mul) + XLU (lane reduce) instead of a
    # 1-column MXU matmul sitting on the epilogue critical path.
    q = jnp.sum(h * w4_ref[...], axis=-1, keepdims=True) + b4_ref[0, 0]
    out_ref[...] = q.astype(out_ref.dtype)


def critic_forward(state, action, params, *, tb=256):
    """state/action: lists of (B, d_i) arrays (pass single-element lists for IQL).

    params must come from pad_params_for_kernel (lane-padded, bf16 weights).
    Returns q of shape (B, 1) in float32.
    """
    # Glue: concat per-agent states/actions (same as torch.cat chain).
    x = jnp.concatenate(list(state) + list(action), axis=1)              # (B, D) f32
    B, D = x.shape

    w1 = params["w1"]
    Dp, Hp = w1.shape                       # padded (128, 128)
    assert D <= Dp, f"input dim {D} exceeds padded weight dim {Dp}"

    tb = max(8, min(tb, _round_up(B, 8)))   # batch tile, multiple of 8 sublanes
    Bp = _round_up(B, tb)                   # padded batch, multiple of tb

    # Single lane-dense, batch-padded bf16 input slab (one glue concat + pad).
    xp = jnp.zeros((Bp, Dp), jnp.bfloat16).at[:B, :D].set(x.astype(jnp.bfloat16))

    grid = (Bp // tb,)
    out = pl.pallas_call(
        critic_kernel,
        out_shape=jax.ShapeDtypeStruct((Bp, 1), jnp.float32),
        grid=grid,
        in_specs=[
            pl.BlockSpec((tb, Dp), lambda i: (i, 0)),           # x: streamed over batch
            pl.BlockSpec((Dp, Hp), lambda i: (0, 0)),           # w1: VMEM-resident
            pl.BlockSpec((1, Hp), lambda i: (0, 0)),            # b1
            pl.BlockSpec((Hp, Hp), lambda i: (0, 0)),           # w2
            pl.BlockSpec((1, Hp), lambda i: (0, 0)),            # b2
            pl.BlockSpec((Hp, Hp), lambda i: (0, 0)),           # w3
            pl.BlockSpec((1, Hp), lambda i: (0, 0)),            # b3
            pl.BlockSpec((1, Hp), lambda i: (0, 0)),            # w4 as a row vector (f32)
            pl.BlockSpec(memory_space=pltpu.MemorySpace.SMEM),  # b4 scalar in SMEM
        ],
        out_specs=pl.BlockSpec((tb, 1), lambda i: (i, 0)),
        compiler_params=pltpu.CompilerParams(
            dimension_semantics=("parallel",)),                 # v7x: shard over 2 TCs
    )(xp,
      params["w1"], params["b1"],
      params["w2"], params["b2"],
      params["w3"], params["b3"],
      params["w4_row"], params["b4"])

    return out[:B]


def init_critic_params(key, in_dim, hidden=64, out_dim=1):
    """Deterministic synthetic init (uniform +/- 1/sqrt(fan_in), like nn.Linear).
    Weights stored as (in_features, out_features) so y = x @ W + b."""
    ks = jax.random.split(key, 8)

    def lin(kw, kb, fan_in, fan_out):
        bound = 1.0 / jnp.sqrt(jnp.float32(fan_in))
        w = jax.random.uniform(kw, (fan_in, fan_out), jnp.float32, -bound, bound)
        b = jax.random.uniform(kb, (1, fan_out), jnp.float32, -bound, bound)
        return w, b

    w1, b1 = lin(ks[0], ks[1], in_dim, hidden)
    w2, b2 = lin(ks[2], ks[3], hidden, hidden)
    w3, b3 = lin(ks[4], ks[5], hidden, hidden)
    w4, b4 = lin(ks[6], ks[7], hidden, out_dim)
    return {"w1": w1, "b1": b1, "w2": w2, "b2": b2,
            "w3": w3, "b3": b3, "w4": w4, "b4": b4}


def pad_params_for_kernel(p):
    """Zero-pad feature/hidden dims to 128 lanes; weights -> bf16, biases -> f32.

    Padding is exact: padded input features are zero, padded hidden units get
    zero weights and zero biases, so they remain exactly zero through ReLU and
    contribute nothing to downstream layers or to q."""
    def pad2(a, rows, cols):
        out = jnp.zeros((rows, cols), a.dtype)
        return out.at[:a.shape[0], :a.shape[1]].set(a)

    D, H = p["w1"].shape
    assert p["w4"].shape[1] == 1, "VPU tail path assumes a single Q output"
    Dp = _round_up(D, LANE)
    Hp = _round_up(H, LANE)
    return {
        "w1": pad2(p["w1"], Dp, Hp).astype(jnp.bfloat16),
        "b1": pad2(p["b1"], 1, Hp),                     # f32
        "w2": pad2(p["w2"], Hp, Hp).astype(jnp.bfloat16),
        "b2": pad2(p["b2"], 1, Hp),                     # f32
        "w3": pad2(p["w3"], Hp, Hp).astype(jnp.bfloat16),
        "b3": pad2(p["b3"], 1, Hp),                     # f32
        "w4_row": pad2(p["w4"].T, 1, Hp),               # f32, used on the VPU
        "b4": p["b4"].reshape(1, 1),                    # f32 scalar for SMEM
    }


def reference_forward(x, p):
    """Pure f32 reference with the unpadded parameters."""
    h = jnp.maximum(x @ p["w1"] + p["b1"], 0.0)
    h = jnp.maximum(h @ p["w2"] + p["b2"], 0.0)
    h = jnp.maximum(h @ p["w3"] + p["b3"], 0.0)
    return h @ p["w4"] + p["b4"]


if __name__ == "__main__":
    key = jax.random.PRNGKey(0)

    # Non-IQL setting: 2 agents, obs_shape=[10, 10], action_shape=[4, 4]
    obs_shape = [10, 10]
    action_shape = [4, 4]
    batch = 300                                   # not a multiple of the tile on purpose
    in_dim = sum(obs_shape) + sum(action_shape)   # 28

    k_state, k_action, k_params = jax.random.split(key, 3)
    state = [jax.random.normal(jax.random.fold_in(k_state, i), (batch, d), jnp.float32)
             for i, d in enumerate(obs_shape)]
    action = [jax.random.normal(jax.random.fold_in(k_action, i), (batch, d), jnp.float32)
              for i, d in enumerate(action_shape)]

    params_f32 = init_critic_params(k_params, in_dim)
    params = pad_params_for_kernel(params_f32)

    q = critic_forward(state, action, params, tb=256)
    q = jax.block_until_ready(q)

    x = jnp.concatenate(state + action, axis=1)
    q_ref = reference_forward(x, params_f32)

    assert q.shape == (batch, 1)
    max_err = float(jnp.max(jnp.abs(q - q_ref)))
    assert jnp.allclose(q, q_ref, atol=2e-2, rtol=2e-2), \
        f"mismatch vs. reference (max abs err {max_err})"

    print("KERNEL_OK")
</pallas_src>

<mosaic_0001>
module attributes {stable_mosaic.version = 11 : i64} {
  func.func @critic_kernel(%arg0: i32, %arg1: memref<256x128xbf16, #tpu.memory_space<vmem>>, %arg2: memref<128x128xbf16, #tpu.memory_space<vmem>>, %arg3: memref<1x128xf32, #tpu.memory_space<vmem>>, %arg4: memref<128x128xbf16, #tpu.memory_space<vmem>>, %arg5: memref<1x128xf32, #tpu.memory_space<vmem>>, %arg6: memref<128x128xbf16, #tpu.memory_space<vmem>>, %arg7: memref<1x128xf32, #tpu.memory_space<vmem>>, %arg8: memref<1x128xf32, #tpu.memory_space<vmem>>, %arg9: memref<1x1xf32, #tpu.memory_space<smem>>, %arg10: memref<256x1xf32, #tpu.memory_space<vmem>>) attributes {dimension_semantics = [#tpu.dimension_semantics<parallel>], iteration_bounds = array<i64: 2>, scalar_prefetch = 0 : i64, scratch_operands = 0 : i64, tpu.core_type = #tpu.core_type<tc>, window_params = [{transform_indices = @transform_0, window_bounds = array<i64: 256, 128>}, {pipeline_mode = #tpu.pipeline_mode<synchronous>, transform_indices = @transform_1, window_bounds = array<i64: 128, 128>}, {pipeline_mode = #tpu.pipeline_mode<synchronous>, transform_indices = @transform_2, window_bounds = array<i64: 1, 128>}, {pipeline_mode = #tpu.pipeline_mode<synchronous>, transform_indices = @transform_3, window_bounds = array<i64: 128, 128>}, {pipeline_mode = #tpu.pipeline_mode<synchronous>, transform_indices = @transform_4, window_bounds = array<i64: 1, 128>}, {pipeline_mode = #tpu.pipeline_mode<synchronous>, transform_indices = @transform_5, window_bounds = array<i64: 128, 128>}, {pipeline_mode = #tpu.pipeline_mode<synchronous>, transform_indices = @transform_6, window_bounds = array<i64: 1, 128>}, {pipeline_mode = #tpu.pipeline_mode<synchronous>, transform_indices = @transform_7, window_bounds = array<i64: 1, 128>}, {transform_indices = @transform_8, window_bounds = array<i64: 1, 1>}, {transform_indices = @transform_9, window_bounds = array<i64: 256, 1>}]} {
    %c0 = arith.constant 0 : index
    %c0_0 = arith.constant 0 : index
    %0 = vector.load %arg1[%c0, %c0_0] : memref<256x128xbf16, #tpu.memory_space<vmem>>, vector<256x128xbf16>
    %c0_1 = arith.constant 0 : index
    %c0_2 = arith.constant 0 : index
    %1 = vector.load %arg2[%c0_1, %c0_2] : memref<128x128xbf16, #tpu.memory_space<vmem>>, vector<128x128xbf16>
    %cst = arith.constant dense<0.000000e+00> : vector<256x128xf32>
    %2 = tpu.matmul %0, %1, %cst {dimension_numbers = #tpu.dot_dimension_numbers<[1], [0], [0], [1], [0, 0, 1, 1], [], []>} : vector<256x128xbf16>, vector<128x128xbf16>, vector<256x128xf32> -> vector<256x128xf32>
    %c0_3 = arith.constant 0 : index
    %c0_4 = arith.constant 0 : index
    %3 = vector.load %arg3[%c0_3, %c0_4] : memref<1x128xf32, #tpu.memory_space<vmem>>, vector<1x128xf32>
    %4 = vector.broadcast %3 : vector<1x128xf32> to vector<256x128xf32>
    %5 = arith.addf %2, %4 : vector<256x128xf32>
    %cst_5 = arith.constant 0.000000e+00 : f32
    %6 = vector.broadcast %cst_5 : f32 to vector<256x128xf32>
    %7 = arith.maximumf %5, %6 : vector<256x128xf32>
    %8 = arith.truncf %7 : vector<256x128xf32> to vector<256x128xbf16>
    %c0_6 = arith.constant 0 : index
    %c0_7 = arith.constant 0 : index
    %9 = vector.load %arg4[%c0_6, %c0_7] : memref<128x128xbf16, #tpu.memory_space<vmem>>, vector<128x128xbf16>
    %cst_8 = arith.constant dense<0.000000e+00> : vector<256x128xf32>
    %10 = tpu.matmul %8, %9, %cst_8 {dimension_numbers = #tpu.dot_dimension_numbers<[1], [0], [0], [1], [0, 0, 1, 1], [], []>} : vector<256x128xbf16>, vector<128x128xbf16>, vector<256x128xf32> -> vector<256x128xf32>
    %c0_9 = arith.constant 0 : index
    %c0_10 = arith.constant 0 : index
    %11 = vector.load %arg5[%c0_9, %c0_10] : memref<1x128xf32, #tpu.memory_space<vmem>>, vector<1x128xf32>
    %12 = vector.broadcast %11 : vector<1x128xf32> to vector<256x128xf32>
    %13 = arith.addf %10, %12 : vector<256x128xf32>
    %cst_11 = arith.constant 0.000000e+00 : f32
    %14 = vector.broadcast %cst_11 : f32 to vector<256x128xf32>
    %15 = arith.maximumf %13, %14 : vector<256x128xf32>
    %16 = arith.truncf %15 : vector<256x128xf32> to vector<256x128xbf16>
    %c0_12 = arith.constant 0 : index
    %c0_13 = arith.constant 0 : index
    %17 = vector.load %arg6[%c0_12, %c0_13] : memref<128x128xbf16, #tpu.memory_space<vmem>>, vector<128x128xbf16>
    %cst_14 = arith.constant dense<0.000000e+00> : vector<256x128xf32>
    %18 = tpu.matmul %16, %17, %cst_14 {dimension_numbers = #tpu.dot_dimension_numbers<[1], [0], [0], [1], [0, 0, 1, 1], [], []>} : vector<256x128xbf16>, vector<128x128xbf16>, vector<256x128xf32> -> vector<256x128xf32>
    %c0_15 = arith.constant 0 : index
    %c0_16 = arith.constant 0 : index
    %19 = vector.load %arg7[%c0_15, %c0_16] : memref<1x128xf32, #tpu.memory_space<vmem>>, vector<1x128xf32>
    %20 = vector.broadcast %19 : vector<1x128xf32> to vector<256x128xf32>
    %21 = arith.addf %18, %20 : vector<256x128xf32>
    %cst_17 = arith.constant 0.000000e+00 : f32
    %22 = vector.broadcast %cst_17 : f32 to vector<256x128xf32>
    %23 = arith.maximumf %21, %22 : vector<256x128xf32>
    %c0_18 = arith.constant 0 : index
    %c0_19 = arith.constant 0 : index
    %24 = vector.load %arg8[%c0_18, %c0_19] : memref<1x128xf32, #tpu.memory_space<vmem>>, vector<1x128xf32>
    %25 = vector.broadcast %24 : vector<1x128xf32> to vector<256x128xf32>
    %26 = arith.mulf %23, %25 : vector<256x128xf32>
    %cst_20 = arith.constant dense<0.000000e+00> : vector<256xf32>
    %27 = vector.multi_reduction <add>, %26, %cst_20 [1] : vector<256x128xf32> to vector<256xf32>
    %28 = vector.shape_cast %27 : vector<256xf32> to vector<256x1xf32>
    %c0_21 = arith.constant 0 : index
    %c0_22 = arith.constant 0 : index
    %29 = memref.load %arg9[%c0_21, %c0_22] : memref<1x1xf32, #tpu.memory_space<smem>>
    %30 = vector.broadcast %29 : f32 to vector<256x1xf32>
    %31 = arith.addf %28, %30 : vector<256x1xf32>
    %c0_23 = arith.constant 0 : index
    %c0_24 = arith.constant 0 : index
    %32 = vector.load %arg10[%c0_23, %c0_24] : memref<256x1xf32, #tpu.memory_space<vmem>>, vector<256x1xf32>
    tpu.vector_store %arg10[%c0_23, %c0_24], %31 {strides = array<i32>} : memref<256x1xf32, #tpu.memory_space<vmem>>, vector<256x1xf32>,
    return
  }
  func.func @transform_0(%arg0: i32) -> (i32, i32) {
    %c0_i32 = arith.constant 0 : i32
    %c0_i32_0 = arith.constant 0 : i32
    return %arg0, %c0_i32 : i32, i32
  }
  func.func @transform_1(%arg0: i32) -> (i32, i32) {
    %c0_i32 = arith.constant 0 : i32
    %c0_i32_0 = arith.constant 0 : i32
    %c0_i32_1 = arith.constant 0 : i32
    return %c0_i32, %c0_i32_0 : i32, i32
  }
  func.func @transform_2(%arg0: i32) -> (i32, i32) {
    %c0_i32 = arith.constant 0 : i32
    %c0_i32_0 = arith.constant 0 : i32
    %c0_i32_1 = arith.constant 0 : i32
    return %c0_i32, %c0_i32_0 : i32, i32
  }
  func.func @transform_3(%arg0: i32) -> (i32, i32) {
    %c0_i32 = arith.constant 0 : i32
    %c0_i32_0 = arith.constant 0 : i32
    %c0_i32_1 = arith.constant 0 : i32
    return %c0_i32, %c0_i32_0 : i32, i32
  }
  func.func @transform_4(%arg0: i32) -> (i32, i32) {
    %c0_i32 = arith.constant 0 : i32
    %c0_i32_0 = arith.constant 0 : i32
    %c0_i32_1 = arith.constant 0 : i32
    return %c0_i32, %c0_i32_0 : i32, i32
  }
  func.func @transform_5(%arg0: i32) -> (i32, i32) {
    %c0_i32 = arith.constant 0 : i32
    %c0_i32_0 = arith.constant 0 : i32
    %c0_i32_1 = arith.constant 0 : i32
    return %c0_i32, %c0_i32_0 : i32, i32
  }
  func.func @transform_6(%arg0: i32) -> (i32, i32) {
    %c0_i32 = arith.constant 0 : i32
    %c0_i32_0 = arith.constant 0 : i32
    %c0_i32_1 = arith.constant 0 : i32
    return %c0_i32, %c0_i32_0 : i32, i32
  }
  func.func @transform_7(%arg0: i32) -> (i32, i32) {
    %c0_i32 = arith.constant 0 : i32
    %c0_i32_0 = arith.constant 0 : i32
    %c0_i32_1 = arith.constant 0 : i32
    return %c0_i32, %c0_i32_0 : i32, i32
  }
  func.func @transform_8(%arg0: i32) -> (i32, i32) {
    %c0_i32 = arith.constant 0 : i32
    %c0_i32_0 = arith.constant 0 : i32
    %c0_i32_1 = arith.constant 0 : i32
    return %c0_i32, %c0_i32_0 : i32, i32
  }
  func.func @transform_9(%arg0: i32) -> (i32, i32) {
    %c0_i32 = arith.constant 0 : i32
    %c0_i32_0 = arith.constant 0 : i32
    return %arg0, %c0_i32 : i32, i32
  }
}

</mosaic_0001>

<bundles_post_ra>
// kernel: tpu_custom_call.1
= control target key start
LH: loop header
LB: loop body
LE: loop exit
PB: predicated region body
PF: predicated region fallthrough
CT: control target
= control target key end

     0   :  { %s2344_s0 = inlined_call_operand.hbm [shape: bf16[512,128], index: 0, kind: input, shape index: {}]   ;;  %s2345_s1 = inlined_call_operand.hbm [shape: bf16[128,128], index: 1, kind: input, shape index: {}]   ;;  %s2346_s2 = inlined_call_operand.vmem [shape: f32[1,128], index: 2, kind: input, shape index: {}]   ;;  %s2347_s3 = inlined_call_operand.hbm [shape: bf16[128,128], index: 3, kind: input, shape index: {}]   ;;  %s2348_s4 = inlined_call_operand.vmem [shape: f32[1,128], index: 4, kind: input, shape index: {}]   ;;  %s2349_s5 = inlined_call_operand.hbm [shape: bf16[128,128], index: 5, kind: input, shape index: {}]   ;;  %s2350_s6 = inlined_call_operand.vmem [shape: f32[1,128], index: 6, kind: input, shape index: {}]   ;;  %s2351_s7 = inlined_call_operand.vmem [shape: f32[1,128], index: 7, kind: input, shape index: {}]   ;;  %s2352_s8 = inlined_call_operand.<no memory space> [shape: f32[1,1], index: 8, kind: input, shape index: {}]   ;;  %s2353_s9 = inlined_call_operand.vmem [shape: f32[512,1], index: 9, kind: output, shape index: {}]  }
   0x1   :  { %2355 = sst [smem:[#allocation13_spill]] %s2345_s1 }
   0x2   :  { %14 = sst [smem:[#allocation2]] %s2352_s8 }
   0x3   :  { %15 = vsyncpa [#allocation4], 0 }
   0x4   :  { %17 = vsyncpa [#allocation4 + $0x1], 0 }
   0x5   :  { %18 = vsyncpa [#allocation6], 0 }
   0x6   :  { %19 = vsyncpa [#allocation9], 0  ;;  %s1940_s11 = smov 0   ;;  %s1942_s12 = smov 0  }
   0x7   :  { %s1944_s13 = smov 0   ;;  %s1946_s14 = smov 0  }
   0x8 LB: > { %s2354_s8 = sadd.s32 4294967295, %s1880_s14   ;;  %p45_p0 = scmp.ne.s32.totalorder %s1872_s12, %s1868_s11  ;;  %s1880_s14 = sphi %s1946_s14, %s2366_s14   ;;  %s1876_s13 = sphi %s1944_s13, %s2365_s13   ;;  %s1872_s12 = sphi %s1942_s12, %s2364_s12   ;;  %s1868_s11 = sphi %s1940_s11, %s2363_s11  }
   0x9   : > { %p1962_p1 = scmp.eq.s32.totalorder %s2354_s8, 0  ;;  %p1400_p2 = scmp.ge.s32.totalorder %s1880_s14, 1 }
   0xa   : > { %p250_p3 = scmp.lt.s32.totalorder %s1880_s14, 3  ;;  %s2358_s1 = sld [smem:[#allocation13_spill]] }
   0xb   : > { %p1970_p4 = por %p1962_p1, %p45_p0  ;;  %s1882_s21 = smov [#allocation5]  }
   0xc   : > { %p1977_p5 = pnand %p1400_p2, %p250_p3  ;;  %s263_s22 = sshll.u32 %s1882_s21, 4  ;;  %s264_s22 = int_to_ptr.vmem [resolvable:$true] %s263_s22 }
   0xd   : > { %s278_s26 = sshll.u32 %s2347_s3, 4  ;;  %s1883_s27 = smov 64   ;;  %s279_s26 = int_to_ptr.hbm [resolvable:$true] %s278_s26 }
   0xe   : > { %p1656_p6 = pneg %p1977_p5  ;;  %s1884_s28 = smov 4  }
   0xf   : > { %s1885_s29 = smov [#allocation7]   ;;  %s295_s17 = sshll.u32 %s2349_s5, 4  ;;  %s296_s17 = int_to_ptr.hbm [resolvable:$true] %s295_s17 }
  0x10   : > { %s261_s19 = sshll.u32 %s2358_s1, 4  ;;  %p1985_p7 = pnand %p1656_p6, %p1962_p1  ;;  %s262_s19 = int_to_ptr.hbm [resolvable:$true] %s261_s19 }
  0x11   : > { %s280_s30 = sshll.u32 %s1885_s29, 4  ;;  %s1886_s18 = smov [#allocation8]   ;;  %s281_s30 = int_to_ptr.vmem [resolvable:$true] %s280_s30 }
  0x12   : > { %1659 = dma.hbm_to_vmem [thread:$0]  (!%p1985_p7), %s262_s19, 1024, %s264_s22, [#allocation6], %s1883_s27, %s1883_s27, %s1884_s28  }
  0x13   : > { %1662 = dma.hbm_to_vmem [thread:$0]  (!%p1985_p7), %s279_s26, 1024, %s281_s30, [#allocation6], %s1883_s27, %s1883_s27, %s1884_s28  }
  0x14   : > { %s297_s19 = sshll.u32 %s1886_s18, 4  ;;  %s2006_s21 = sadd.s32 1, %s1880_s14   ;;  %s298_s19 = int_to_ptr.vmem [resolvable:$true] %s297_s19 }
  0x15   : > { %1665 = dma.hbm_to_vmem [thread:$0]  (!%p1985_p7), %s296_s17, 1024, %s298_s19, [#allocation9], %s1883_s27, %s1883_s27, %s1884_s28  }
  0x16   : > { %s29_s22 = ssub.s32 %s1880_s14, %s2006_s21  ;;  %s32_s24 = sadd.s32 1, %s1876_s13 }
  0x17   : > { %p30_p8 = scmp.eq.s32.totalorder %s29_s22, 0  ;;  %p39_p9 = scmp.ne.s32.totalorder %s1876_s13, %s1872_s12 }
  0x18   : > { %p40_p10 = scmp.eq.s32.totalorder %s1880_s14, 0  ;;  %p1673_p11 = scmp.lt.s32.totalorder %s1880_s14, 2 }
  0x19   : > { %s2021_s25 = scalar_select %p30_p8, %s1876_s13, %s32_s24  }
  0x1a   : > { %p41_p12 = por %p40_p10, %p39_p9  ;;  %s320_s26 = sand.u32 1, %s1876_s13  }
  0x1b   : > { %s1405_s29 = sshll.u32 %s320_s26, 7  ;;  %s1577_s30 = sshll.u32 %s1880_s14, 7 }
  0x1c   : > { %s329_s23 = scalar_lea.hbm %s2344_s0, %s1577_s30  ;;  %s324_s18 = scalar_lea.vmem [#allocation3], %s1405_s29 }
  0x1d   : > { %s332_s8 = sshll.u32 %s324_s18, 4  ;;  %s330_s1 = sshll.u32 %s329_s23, 4  ;;  %s333_s8 = int_to_ptr.vmem [resolvable:$true] %s332_s8  ;;  %s331_s1 = int_to_ptr.hbm [resolvable:$true] %s330_s1 }
  0x1e   : > { %p2028_p13 = pnand %p1673_p11, %p41_p12  ;;  %s321_s19 = scalar_lea.sflag [#allocation4], %s320_s26 }
  0x1f   : > { %s1808_s22 = sshra.s32 %s331_s1, 4  ;;  %s1815_s10 = scalar_lea.hbm %s2344_s0, 256  ;;  %s1809_s22 = int_to_ptr.hbm [resolvable:$true] %s1808_s22 }
  0x20   : > { %s1810_s24 = scalar_lea.hbm %s1809_s22, 128  ;;  %p1812_p2 = pneg %p2028_p13 }
  0x21   : > { %p1811_p0 = scmp.ne.s32.totalorder %s1809_s22, %s1810_s24  ;;  %p1816_p7 = scmp.lt.s32.totalorder %s1809_s22, %s2344_s0 }
  0x22   : > { %p1817_p8 = scmp.lt.s32.totalorder %s1815_s10, %s1810_s24 }
  0x23   : > { %p1813_p3 = pnand %p1812_p2, %p1811_p0 }
  0x24   : > { %p1818_p9 = por %p1817_p8, %p1816_p7 }
  0x25   : > { %p1814_p6 = pneg %p1813_p3 }
  0x27   : > { %p1819_p10 = pnand %p1818_p9, %p1814_p6 }
  0x29   : > { %1822 = shalt.err (!%p1819_p10)
}
  0x2a   : > { %1669 = dma.hbm_to_vmem [thread:$0]  (!%p2028_p13), %s331_s1, 2048, %s333_s8, %s321_s19, %s1883_s27, %s1883_s27, %s1884_s28  }
  0x2b   : > { %344 = sbr.rel (%p1977_p5) target bundleno = 814 (0x32e), region = 56  ;;  %s346_s26 = sand.u32 (!%p1977_p5), 1, %s1872_s12  }
  0x2c   : > { %s1409_s18 = sshll.u32 (!%p1977_p5), %s346_s26, 7  ;;  %s347_s30 = scalar_lea.sflag (!%p1977_p5), [#allocation4], %s346_s26 }
  0x2d   : > { %s2048_s29 = scalar_lea.vmem (!%p1977_p5), [#allocation3], %s1409_s18 }
  0x30   : > { %1855 = dma.done.wait (%p1970_p4), %s347_s30, 2048  }
  0x31   : > { %1857 = vsyncadd (%p1970_p4), %s347_s30, 4294965248 }
  0x32   : > { %1859 = dma.done.wait (%p1962_p1), [#allocation6], 2048  }
  0x33   : > { %1861 = vsyncadd (%p1962_p1), [#allocation6], 4294965248 }
  0x34   : > { %1863 = dma.done.wait (%p1962_p1), [#allocation9], 1024  }
  0x35   : > { %1865 = vsyncadd (%p1962_p1), [#allocation9], 4294966272  ;;  %v1601_v0 = vld [vmem:[#allocation5 + $0x38] sm:$0xff]  ;;  %v1600_v1 = vld [vmem:[#allocation5 + $0x30] sm:$0xff]  ;;  %s2362_s19 = sadd.s32 4294967295, %s1880_s14   ;;  %s1235_s24 = sld [smem:[#allocation2]] }
  0x36   : > { %604 = vmatpush.bf16.msra.mxu0 %v1601_v0  ;;  %1618 = vmatpush.bf16.msra.mxu3 %v1601_v0  ;;  %v1599_v2 = vld [vmem:[#allocation5 + $0x28] sm:$0xff]  ;;  %v1598_v3 = vld [vmem:[#allocation5 + $0x20] sm:$0xff]  ;;  %v1597_v4 = vld [vmem:[#allocation5 + $0x18] sm:$0xff]  ;;  %s1413_s22 = sshll.u32 %s2362_s19, 5  ;;  %vm1269_vm0 = vcmask 7168  }
  0x37   : > { %v1596_v5 = vld [vmem:[#allocation5 + $0x10] sm:$0xff]  ;;  %v1595_v6 = vld [vmem:[#allocation5 + $0x8] sm:$0xff]  ;;  %v1594_v7 = vld [vmem:[#allocation5] sm:$0xff]  ;;  %p403_p1 = scmp.lt.s32.totalorder %s1413_s22, 63 }
  0x38   : > { %v1578_v8 = vld [vmem:[%s2048_s29] sm:$0xff]  ;;  %v1579_v10 = vld [vmem:[%s2048_s29 + $0x8] sm:$0xff]  ;;  %v1580_v12 = vld [vmem:[%s2048_s29 + $0x10] sm:$0xff] }
  0x39   : > { %v1590_v9 = vld [vmem:[%s2048_s29 + $0x60] sm:$0xff]  ;;  %v1591_v11 = vld [vmem:[%s2048_s29 + $0x68] sm:$0xff]  ;;  %v1592_v13 = vld [vmem:[%s2048_s29 + $0x70] sm:$0xff]  ;;  %s2368_s22 = smov (!%p403_p1, %s1413_s22), 63 }
  0x3a   : > { %605 = vmatpush.bf16.msra.mxu0 %v1600_v1  ;;  %1619 = vmatpush.bf16.msra.mxu3 %v1600_v1  ;;  %v1581_v14 = vld [vmem:[%s2048_s29 + $0x18] sm:$0xff]  ;;  %v1582_v15 = vld [vmem:[%s2048_s29 + $0x20] sm:$0xff]  ;;  %v1583_v17 = vld [vmem:[%s2048_s29 + $0x28] sm:$0xff]  ;;  %s1414_s10 = sshll.u32 %s2368_s22, 3 }
  0x3b   : > { %v1609_v16 = vld [vmem:[#allocation7 + $0x38] sm:$0xff]  ;;  %v1608_v18 = vld [vmem:[#allocation7 + $0x30] sm:$0xff]  ;;  %v1607_v19 = vld [vmem:[#allocation7 + $0x28] sm:$0xff]  ;;  %s2210_s23 = scalar_lea.vmem %s2353_s9, %s1414_s10 }
  0x3c   : > { %809 = vmatpush.bf16.msra.mxu1 %v1609_v16  ;;  %v1606_v20 = vld [vmem:[#allocation7 + $0x20] sm:$0xff]  ;;  %v1605_v21 = vld [vmem:[#allocation7 + $0x18] sm:$0xff]  ;;  %v1584_v22 = vld [vmem:[%s2048_s29 + $0x30] sm:$0xff] }
  0x3d   : > { %v1604_v23 = vld [vmem:[#allocation7 + $0x10] sm:$0xff]  ;;  %v1593_v24 = vld [vmem:[%s2048_s29 + $0x78] sm:$0xff]  ;;  %v1603_v25 = vld [vmem:[#allocation7 + $0x8] sm:$0xff] }
  0x3e   : > { %606 = vmatpush.bf16.msra.mxu0 %v1599_v2  ;;  %1620 = vmatpush.bf16.msra.mxu3 %v1599_v2  ;;  %v1602_v26 = vld [vmem:[#allocation7] sm:$0xff]  ;;  %v1585_v27 = vld [vmem:[%s2048_s29 + $0x38] sm:$0xff]  ;;  %v1587_v42 = vld [vmem:[%s2048_s29 + $0x48] sm:$0xff] }
  0x3f   : > { %v1586_v28 = vld [vmem:[%s2048_s29 + $0x40] sm:$0xff]  ;;  %v1588_v57 = vld [vmem:[%s2048_s29 + $0x50] sm:$0xff] }
  0x40   : > { %810 = vmatpush.bf16.msra.mxu1 %v1608_v18  ;;  %v2078_v30 = vld [vmem:[%s2346_s2] ss:$0 sm:$0xff] }
  0x42   : > { %607 = vmatpush.bf16.msra.mxu0 %v1598_v3  ;;  %1621 = vmatpush.bf16.msra.mxu3 %v1598_v3 }
  0x44   : > { %811 = vmatpush.bf16.msra.mxu1 %v1607_v19 }
  0x46   : > { %608 = vmatpush.bf16.msra.mxu0 %v1597_v4  ;;  %1622 = vmatpush.bf16.msra.mxu3 %v1597_v4 }
  0x48   : > { %812 = vmatpush.bf16.msra.mxu1 %v1606_v20 }
  0x4a   : > { %609 = vmatpush.bf16.msra.mxu0 %v1596_v5  ;;  %1623 = vmatpush.bf16.msra.mxu3 %v1596_v5 }
  0x4c   : > { %813 = vmatpush.bf16.msra.mxu1 %v1605_v21 }
  0x4e   : > { %610 = vmatpush.bf16.msra.mxu0 %v1595_v6  ;;  %1624 = vmatpush.bf16.msra.mxu3 %v1595_v6 }
  0x50   : > { %814 = vmatpush.bf16.msra.mxu1 %v1604_v23 }
  0x52   : > { %611 = vmatpush.bf16.msra.mxu0 %v1594_v7  ;;  %1625 = vmatpush.bf16.msra.mxu3 %v1594_v7 }
  0x54   : > { %815 = vmatpush.bf16.msra.mxu1 %v1603_v25 }
  0x55   : > { %612 = vmatmul.bf16.vlgmr.msra.gmra.mxu0 %v1578_v8  ;;  %672 = vmatmul.bf16.vlgmr.msra.gmra.mxu3 %v1590_v9  ;;  %v1589_v8 = vld [vmem:[%s2048_s29 + $0x58] sm:$0xff] }
  0x56   : > { %1626 = vmatpush.bf16.msrb.mxu3 %v1609_v16 }
  0x58   : > { %816 = vmatpush.bf16.msra.mxu1 %v1602_v26 }
  0x5a   : > { %1627 = vmatpush.bf16.msrb.mxu3 %v1608_v18 }
  0x5e   : > { %1628 = vmatpush.bf16.msrb.mxu3 %v1607_v19 }
  0x62   : > { %1629 = vmatpush.bf16.msrb.mxu3 %v1606_v20 }
  0x65   : > { %617 = vmatmul.bf16.gmra.mxu0 %v1579_v10  ;;  %677 = vmatmul.bf16.gmra.mxu3 %v1591_v11 }
  0x66   : > { %1630 = vmatpush.bf16.msrb.mxu3 %v1605_v21 }
  0x6a   : > { %1631 = vmatpush.bf16.msrb.mxu3 %v1604_v23 }
  0x6e   : > { %1632 = vmatpush.bf16.msrb.mxu3 %v1603_v25 }
  0x72   : > { %1633 = vmatpush.bf16.msrb.mxu3 %v1602_v26 }
  0x75   : > { %622 = vmatmul.bf16.gmra.mxu0 %v1580_v12  ;;  %682 = vmatmul.bf16.gmra.mxu3 %v1592_v13 }
  0x85   : > { %627 = vmatmul.bf16.gmra.mxu0 %v1581_v14  ;;  %687 = vmatmul.bf16.gmra.mxu3 %v1593_v24 }
  0x95   : > { %632 = vmatmul.bf16.gmra.mxu0 %v1582_v15 }
  0xa5   : > { %637 = vmatmul.bf16.gmra.mxu0 %v1583_v17 }
  0xb5   : > { %642 = vmatmul.bf16.gmra.mxu0 %v1584_v22 }
  0xc5   : > { %647 = vmatmul.bf16.gmra.mxu0 %v1585_v27 }
  0xd2   : > { %v613_v29 = vpop.f32.mrf.mxu0 }
  0xd3   : > { %v614_v32 = vadd.f32 %v2078_v30, %v613_v29  ;;  %v1617_v29 = vld [vmem:[#allocation8 + $0x38] sm:$0xff] }
  0xd4   : > { %1014 = vmatpush.bf16.msra.mxu2 %v1617_v29  ;;  %1634 = vmatpush.bf16.msra.mxu3 %v1617_v29 }
  0xd5   : > { %652 = vmatmul.bf16.gmra.mxu0 %v1586_v28  ;;  %v693_v35 = vmax.f32 %v614_v32, 0.0 }
  0xd8   : > { %v673_v31 = vpop.f32.mrf.mxu3 }
  0xd9   : > { %v674_v36 = vadd.f32 %v2078_v30, %v673_v31 }
  0xda   : > { %v615_v33 = vpop.f32.mrf.mxu0 }
  0xdb   : > { %v616_v34 = vadd.f32 %v2078_v30, %v615_v33  ;;  %v717_v40 = vmax.f32 %v674_v36, 0.0  ;;  %v1615_v36 = vld [vmem:[#allocation8 + $0x28] sm:$0xff] }
  0xdd   : > { %v694_v37 = vmax.f32 %v616_v34, 0.0  ;;  %v1616_v34 = vld [vmem:[#allocation8 + $0x30] sm:$0xff] }
  0xde   : > { %1015 = vmatpush.bf16.msra.mxu2 %v1616_v34  ;;  %1635 = vmatpush.bf16.msra.mxu3 %v1616_v34 }
  0xdf   : > { %v725_v38 = vpack.c.bf16 %v694_v37, %v693_v35  ;;  %v1614_v37 = vld [vmem:[#allocation8 + $0x20] sm:$0xff] }
  0xe0   : > { %v675_v39 = vpop.f32.mrf.mxu3 }
  0xe1   : > { %v676_v41 = vadd.f32 %v2078_v30, %v675_v39  ;;  %817 = vmatmul.bf16.vlgmr.msra.gmra.mxu1 %v725_v38 }
  0xe2   : > { %v618_v43 = vpop.f32.mrf.mxu0  ;;  %1016 = vmatpush.bf16.msra.mxu2 %v1615_v36  ;;  %1636 = vmatpush.bf16.msra.mxu3 %v1615_v36 }
  0xe3   : > { %v718_v44 = vmax.f32 %v676_v41, 0.0  ;;  %v619_v47 = vadd.f32 %v2078_v30, %v618_v43 }
  0xe5   : > { %v737_v45 = vpack.c.bf16 %v718_v44, %v717_v40  ;;  %657 = vmatmul.bf16.gmra.mxu0 %v1587_v42  ;;  %v695_v50 = vmax.f32 %v619_v47, 0.0  ;;  %v1613_v42 = vld [vmem:[#allocation8 + $0x18] sm:$0xff]  ;;  %v1612_v47 = vld [vmem:[#allocation8 + $0x10] sm:$0xff] }
  0xe6   : > { %1017 = vmatpush.bf16.msra.mxu2 %v1614_v37  ;;  %1637 = vmatpush.bf16.msra.mxu3 %v1614_v37 }
  0xe7   : > { %877 = vmatmul.bf16.vlgmr.msrb.gmra.mxu3 %v737_v45 }
  0xe8   : > { %v678_v46 = vpop.f32.mrf.mxu3 }
  0xe9   : > { %v679_v51 = vadd.f32 %v2078_v30, %v678_v46 }
  0xea   : > { %v620_v48 = vpop.f32.mrf.mxu0  ;;  %1018 = vmatpush.bf16.msra.mxu2 %v1613_v42  ;;  %1638 = vmatpush.bf16.msra.mxu3 %v1613_v42 }
  0xeb   : > { %v621_v49 = vadd.f32 %v2078_v30, %v620_v48  ;;  %v719_v55 = vmax.f32 %v679_v51, 0.0 }
  0xed   : > { %v696_v52 = vmax.f32 %v621_v49, 0.0 }
  0xee   : > { %1019 = vmatpush.bf16.msra.mxu2 %v1612_v47  ;;  %1639 = vmatpush.bf16.msra.mxu3 %v1612_v47 }
  0xef   : > { %v726_v53 = vpack.c.bf16 %v696_v52, %v695_v50  ;;  %v1611_v52 = vld [vmem:[#allocation8 + $0x8] sm:$0xff] }
  0xf0   : > { %v680_v54 = vpop.f32.mrf.mxu3 }
  0xf1   : > { %v681_v56 = vadd.f32 %v2078_v30, %v680_v54  ;;  %822 = vmatmul.bf16.gmra.mxu1 %v726_v53 }
  0xf2   : > { %v623_v58 = vpop.f32.mrf.mxu0  ;;  %1020 = vmatpush.bf16.msra.mxu2 %v1611_v52  ;;  %1640 = vmatpush.bf16.msra.mxu3 %v1611_v52 }
  0xf3   : > { %v720_v59 = vmax.f32 %v681_v56, 0.0  ;;  %v624_v62 = vadd.f32 %v2078_v30, %v623_v58 }
  0xf5   : > { %662 = vmatmul.bf16.gmra.mxu0 %v1588_v57  ;;  %v738_v60 = vpack.c.bf16 %v720_v59, %v719_v55  ;;  %v697_v1 = vmax.f32 %v624_v62, 0.0  ;;  %v1610_v55 = vld [vmem:[#allocation8] sm:$0xff] }
  0xf6   : > { %1021 = vmatpush.bf16.msra.mxu2 %v1610_v55  ;;  %1641 = vmatpush.bf16.msra.mxu3 %v1610_v55 }
  0xf7   : > { %882 = vmatmul.bf16.gmra.mxu3 %v738_v60 }
  0xf8   : > { %v683_v61 = vpop.f32.mrf.mxu3 }
  0xf9   : > { %v684_v3 = vadd.f32 %v2078_v30, %v683_v61 }
  0xfa   : > { %v625_v63 = vpop.f32.mrf.mxu0 }
  0xfb   : > { %v626_v0 = vadd.f32 %v2078_v30, %v625_v63  ;;  %v721_v6 = vmax.f32 %v684_v3, 0.0 }
  0xfd   : > { %v698_v2 = vmax.f32 %v626_v0, 0.0 }
  0xff   : > { %v727_v4 = vpack.c.bf16 %v698_v2, %v697_v1 }
 0x100   : > { %v685_v5 = vpop.f32.mrf.mxu3 }
 0x101   : > { %827 = vmatmul.bf16.gmra.mxu1 %v727_v4  ;;  %v686_v7 = vadd.f32 %v2078_v30, %v685_v5 }
 0x102   : > { %v628_v9 = vpop.f32.mrf.mxu0 }
 0x103   : > { %v722_v10 = vmax.f32 %v686_v7, 0.0  ;;  %v629_v12 = vadd.f32 %v2078_v30, %v628_v9 }
 0x105   : > { %667 = vmatmul.bf16.gmra.mxu0 %v1589_v8  ;;  %v739_v11 = vpack.c.bf16 %v722_v10, %v721_v6  ;;  %v699_v15 = vmax.f32 %v629_v12, 0.0  ;;  %v2112_v6 = vld [vmem:[%s2348_s4] ss:$0 sm:$0xff] }
 0x107   : > { %887 = vmatmul.bf16.gmra.mxu3 %v739_v11 }
 0x108   : > { %v688_v40 = vpop.f32.mrf.mxu3 }
 0x109   : > { %v689_v46 = vadd.f32 %v2078_v30, %v688_v40 }
 0x10a   : > { %v630_v13 = vpop.f32.mrf.mxu0 }
 0x10b   : > { %v631_v14 = vadd.f32 %v2078_v30, %v630_v13  ;;  %v723_v50 = vmax.f32 %v689_v46, 0.0 }
 0x10d   : > { %v700_v16 = vmax.f32 %v631_v14, 0.0 }
 0x10f   : > { %v728_v17 = vpack.c.bf16 %v700_v16, %v699_v15 }
 0x110   : > { %v690_v49 = vpop.f32.mrf.mxu3 }
 0x111   : > { %832 = vmatmul.bf16.gmra.mxu1 %v728_v17  ;;  %v691_v51 = vadd.f32 %v2078_v30, %v690_v49 }
 0x112   : > { %v633_v18 = vpop.f32.mrf.mxu0 }
 0x113   : > { %v634_v19 = vadd.f32 %v2078_v30, %v633_v18  ;;  %v724_v53 = vmax.f32 %v691_v51, 0.0 }
 0x115   : > { %v701_v22 = vmax.f32 %v634_v19, 0.0  ;;  %v740_v54 = vpack.c.bf16 %v724_v53, %v723_v50 }
 0x117   : > { %892 = vmatmul.bf16.gmra.mxu3 %v740_v54 }
 0x11a   : > { %v635_v20 = vpop.f32.mrf.mxu0 }
 0x11b   : > { %v636_v21 = vadd.f32 %v2078_v30, %v635_v20 }
 0x11d   : > { %v702_v23 = vmax.f32 %v636_v21, 0.0 }
 0x11f   : > { %v729_v24 = vpack.c.bf16 %v702_v23, %v701_v22 }
 0x121   : > { %837 = vmatmul.bf16.gmra.mxu1 %v729_v24 }
 0x122   : > { %v638_v25 = vpop.f32.mrf.mxu0 }
 0x123   : > { %v639_v26 = vadd.f32 %v2078_v30, %v638_v25 }
 0x125   : > { %v703_v31 = vmax.f32 %v639_v26, 0.0 }
 0x12a   : > { %v640_v27 = vpop.f32.mrf.mxu0 }
 0x12b   : > { %v641_v28 = vadd.f32 %v2078_v30, %v640_v27 }
 0x12d   : > { %v704_v32 = vmax.f32 %v641_v28, 0.0 }
 0x12f   : > { %v730_v33 = vpack.c.bf16 %v704_v32, %v703_v31 }
 0x131   : > { %842 = vmatmul.bf16.gmra.mxu1 %v730_v33 }
 0x132   : > { %v643_v35 = vpop.f32.mrf.mxu0 }
 0x133   : > { %v644_v38 = vadd.f32 %v2078_v30, %v643_v35 }
 0x135   : > { %v705_v43 = vmax.f32 %v644_v38, 0.0 }
 0x13a   : > { %v645_v39 = vpop.f32.mrf.mxu0 }
 0x13b   : > { %v646_v41 = vadd.f32 %v2078_v30, %v645_v39 }
 0x13d   : > { %v706_v44 = vmax.f32 %v646_v41, 0.0 }
 0x13f   : > { %v731_v45 = vpack.c.bf16 %v706_v44, %v705_v43 }
 0x141   : > { %847 = vmatmul.bf16.gmra.mxu1 %v731_v45 }
 0x142   : > { %v648_v48 = vpop.f32.mrf.mxu0 }
 0x143   : > { %v649_v56 = vadd.f32 %v2078_v30, %v648_v48 }
 0x145   : > { %v707_v59 = vmax.f32 %v649_v56, 0.0 }
 0x14a   : > { %v650_v57 = vpop.f32.mrf.mxu0 }
 0x14b   : > { %v651_v58 = vadd.f32 %v2078_v30, %v650_v57 }
 0x14d   : > { %v708_v60 = vmax.f32 %v651_v58, 0.0 }
 0x14f   : > { %v732_v61 = vpack.c.bf16 %v708_v60, %v707_v59 }
 0x151   : > { %852 = vmatmul.bf16.gmra.mxu1 %v732_v61 }
 0x152   : > { %v653_v62 = vpop.f32.mrf.mxu0 }
 0x153   : > { %v654_v63 = vadd.f32 %v2078_v30, %v653_v62 }
 0x155   : > { %v709_v2 = vmax.f32 %v654_v63, 0.0 }
 0x15a   : > { %v655_v0 = vpop.f32.mrf.mxu0 }
 0x15b   : > { %v656_v1 = vadd.f32 %v2078_v30, %v655_v0 }
 0x15d   : > { %v710_v3 = vmax.f32 %v656_v1, 0.0 }
 0x15e   : > { %v818_v4 = vpop.f32.mrf.mxu1 }
 0x15f   : > { %v733_v5 = vpack.c.bf16 %v710_v3, %v709_v2  ;;  %v819_v8 = vadd.f32 %v2112_v6, %v818_v4 }
 0x161   : > { %857 = vmatmul.bf16.gmra.mxu1 %v733_v5  ;;  %v898_v11 = vmax.f32 %v819_v8, 0.0 }
 0x162   : > { %v658_v7 = vpop.f32.mrf.mxu0 }
 0x163   : > { %v659_v12 = vadd.f32 %v2078_v30, %v658_v7 }
 0x165   : > { %v711_v18 = vmax.f32 %v659_v12, 0.0 }
 0x166   : > { %v820_v9 = vpop.f32.mrf.mxu1 }
 0x167   : > { %v821_v10 = vadd.f32 %v2112_v6, %v820_v9 }
 0x169   : > { %v899_v13 = vmax.f32 %v821_v10, 0.0 }
 0x16a   : > { %v660_v14 = vpop.f32.mrf.mxu0  ;;  %v878_v15 = vpop.f32.mrf.mxu3 }
 0x16b   : > { %v661_v16 = vadd.f32 %v2078_v30, %v660_v14  ;;  %v930_v17 = vpack.c.bf16 %v899_v13, %v898_v11  ;;  %v879_v21 = vadd.f32 %v2112_v6, %v878_v15 }
 0x16d   : > { %v712_v19 = vmax.f32 %v661_v16, 0.0  ;;  %1022 = vmatmul.bf16.vlgmr.msra.gmra.mxu2 %v930_v17  ;;  %v922_v25 = vmax.f32 %v879_v21, 0.0 }
 0x16e   : > { %v823_v20 = vpop.f32.mrf.mxu1 }
 0x16f   : > { %v734_v22 = vpack.c.bf16 %v712_v19, %v711_v18  ;;  %v824_v27 = vadd.f32 %v2112_v6, %v823_v20 }
 0x171   : > { %862 = vmatmul.bf16.gmra.mxu1 %v734_v22  ;;  %v900_v33 = vmax.f32 %v824_v27, 0.0 }
 0x172   : > { %v663_v23 = vpop.f32.mrf.mxu0  ;;  %v880_v24 = vpop.f32.mrf.mxu3 }
 0x173   : > { %v881_v26 = vadd.f32 %v2112_v6, %v880_v24  ;;  %v664_v34 = vadd.f32 %v2078_v30, %v663_v23 }
 0x175   : > { %v923_v28 = vmax.f32 %v881_v26, 0.0  ;;  %v713_v40 = vmax.f32 %v664_v34, 0.0 }
 0x176   : > { %v825_v29 = vpop.f32.mrf.mxu1 }
 0x177   : > { %v942_v31 = vpack.c.bf16 %v923_v28, %v922_v25  ;;  %v826_v32 = vadd.f32 %v2112_v6, %v825_v29 }
 0x179   : > { %v901_v35 = vmax.f32 %v826_v32, 0.0  ;;  %1082 = vmatmul.bf16.vlgmr.msra.gmra.mxu3 %v942_v31 }
 0x17a   : > { %v665_v36 = vpop.f32.mrf.mxu0  ;;  %v883_v37 = vpop.f32.mrf.mxu3 }
 0x17b   : > { %v666_v38 = vadd.f32 %v2078_v30, %v665_v36  ;;  %v931_v39 = vpack.c.bf16 %v901_v35, %v900_v33  ;;  %v884_v43 = vadd.f32 %v2112_v6, %v883_v37 }
 0x17d   : > { %v714_v41 = vmax.f32 %v666_v38, 0.0  ;;  %1027 = vmatmul.bf16.gmra.mxu2 %v931_v39  ;;  %v924_v47 = vmax.f32 %v884_v43, 0.0 }
 0x17e   : > { %v828_v42 = vpop.f32.mrf.mxu1 }
 0x17f   : > { %v735_v44 = vpack.c.bf16 %v714_v41, %v713_v40  ;;  %v829_v49 = vadd.f32 %v2112_v6, %v828_v42 }
 0x181   : > { %867 = vmatmul.bf16.gmra.mxu1 %v735_v44  ;;  %v902_v54 = vmax.f32 %v829_v49, 0.0 }
 0x182   : > { %v668_v45 = vpop.f32.mrf.mxu0  ;;  %v885_v46 = vpop.f32.mrf.mxu3 }
 0x183   : > { %v886_v48 = vadd.f32 %v2112_v6, %v885_v46  ;;  %v669_v55 = vadd.f32 %v2078_v30, %v668_v45 }
 0x185   : > { %v925_v50 = vmax.f32 %v886_v48, 0.0  ;;  %v715_v61 = vmax.f32 %v669_v55, 0.0 }
 0x186   : > { %v830_v51 = vpop.f32.mrf.mxu1 }
 0x187   : > { %v831_v52 = vadd.f32 %v2112_v6, %v830_v51  ;;  %v943_v53 = vpack.c.bf16 %v925_v50, %v924_v47 }
 0x189   : > { %v903_v56 = vmax.f32 %v831_v52, 0.0  ;;  %1087 = vmatmul.bf16.gmra.mxu3 %v943_v53 }
 0x18a   : > { %v670_v57 = vpop.f32.mrf.mxu0  ;;  %v888_v58 = vpop.f32.mrf.mxu3 }
 0x18b   : > { %v671_v59 = vadd.f32 %v2078_v30, %v670_v57  ;;  %v932_v60 = vpack.c.bf16 %v903_v56, %v902_v54  ;;  %v889_v0 = vadd.f32 %v2112_v6, %v888_v58  ;;  %v2149_v56 = vld [vmem:[%s2350_s6] ss:$0 sm:$0xff] }
 0x18d   : > { %v716_v62 = vmax.f32 %v671_v59, 0.0  ;;  %1032 = vmatmul.bf16.gmra.mxu2 %v932_v60  ;;  %v926_v3 = vmax.f32 %v889_v0, 0.0  ;;  %v2155_v60 = vld [vmem:[%s2351_s7] ss:$0 sm:$0xff] }
 0x18e   : > { %v833_v63 = vpop.f32.mrf.mxu1 }
 0x18f   : > { %v736_v1 = vpack.c.bf16 %v716_v62, %v715_v61  ;;  %v834_v5 = vadd.f32 %v2112_v6, %v833_v63 }
 0x191   : > { %872 = vmatmul.bf16.gmra.mxu1 %v736_v1  ;;  %v904_v10 = vmax.f32 %v834_v5, 0.0 }
 0x192   : > { %v890_v2 = vpop.f32.mrf.mxu3 }
 0x193   : > { %v891_v4 = vadd.f32 %v2112_v6, %v890_v2 }
 0x195   : > { %v927_v7 = vmax.f32 %v891_v4, 0.0 }
 0x196   : > { %v835_v8 = vpop.f32.mrf.mxu1 }
 0x197   : > { %v836_v9 = vadd.f32 %v2112_v6, %v835_v8  ;;  %v944_v30 = vpack.c.bf16 %v927_v7, %v926_v3 }
 0x199   : > { %v905_v11 = vmax.f32 %v836_v9, 0.0  ;;  %1092 = vmatmul.bf16.gmra.mxu3 %v944_v30 }
 0x19a   : > { %v893_v39 = vpop.f32.mrf.mxu3 }
 0x19b   : > { %v933_v12 = vpack.c.bf16 %v905_v11, %v904_v10  ;;  %v894_v45 = vadd.f32 %v2112_v6, %v893_v39 }
 0x19d   : > { %1037 = vmatmul.bf16.gmra.mxu2 %v933_v12  ;;  %v928_v50 = vmax.f32 %v894_v45, 0.0 }
 0x19e   : > { %v838_v13 = vpop.f32.mrf.mxu1 }
 0x19f   : > { %v839_v14 = vadd.f32 %v2112_v6, %v838_v13 }
 0x1a1   : > { %v906_v17 = vmax.f32 %v839_v14, 0.0 }
 0x1a2   : > { %v895_v44 = vpop.f32.mrf.mxu3 }
 0x1a3   : > { %v896_v46 = vadd.f32 %v2112_v6, %v895_v44 }
 0x1a5   : > { %v929_v51 = vmax.f32 %v896_v46, 0.0 }
 0x1a6   : > { %v840_v15 = vpop.f32.mrf.mxu1 }
 0x1a7   : > { %v841_v16 = vadd.f32 %v2112_v6, %v840_v15  ;;  %v945_v55 = vpack.c.bf16 %v929_v51, %v928_v50 }
 0x1a9   : > { %v907_v18 = vmax.f32 %v841_v16, 0.0  ;;  %1097 = vmatmul.bf16.gmra.mxu3 %v945_v55 }
 0x1ab   : > { %v934_v19 = vpack.c.bf16 %v907_v18, %v906_v17 }
 0x1ad   : > { %1042 = vmatmul.bf16.gmra.mxu2 %v934_v19 }
 0x1ae   : > { %v843_v20 = vpop.f32.mrf.mxu1 }
 0x1af   : > { %v844_v21 = vadd.f32 %v2112_v6, %v843_v20 }
 0x1b1   : > { %v908_v24 = vmax.f32 %v844_v21, 0.0 }
 0x1b6   : > { %v845_v22 = vpop.f32.mrf.mxu1 }
 0x1b7   : > { %v846_v23 = vadd.f32 %v2112_v6, %v845_v22 }
 0x1b9   : > { %v909_v25 = vmax.f32 %v846_v23, 0.0 }
 0x1bb   : > { %v935_v26 = vpack.c.bf16 %v909_v25, %v908_v24 }
 0x1bd   : > { %1047 = vmatmul.bf16.gmra.mxu2 %v935_v26 }
 0x1be   : > { %v848_v27 = vpop.f32.mrf.mxu1 }
 0x1bf   : > { %v849_v28 = vadd.f32 %v2112_v6, %v848_v27 }
 0x1c1   : > { %v910_v32 = vmax.f32 %v849_v28, 0.0 }
 0x1c6   : > { %v850_v29 = vpop.f32.mrf.mxu1 }
 0x1c7   : > { %v851_v31 = vadd.f32 %v2112_v6, %v850_v29 }
 0x1c9   : > { %v911_v33 = vmax.f32 %v851_v31, 0.0 }
 0x1cb   : > { %v936_v34 = vpack.c.bf16 %v911_v33, %v910_v32 }
 0x1cd   : > { %1052 = vmatmul.bf16.gmra.mxu2 %v936_v34 }
 0x1ce   : > { %v853_v35 = vpop.f32.mrf.mxu1 }
 0x1cf   : > { %v854_v36 = vadd.f32 %v2112_v6, %v853_v35 }
 0x1d1   : > { %v912_v40 = vmax.f32 %v854_v36, 0.0 }
 0x1d6   : > { %v855_v37 = vpop.f32.mrf.mxu1 }
 0x1d7   : > { %v856_v38 = vadd.f32 %v2112_v6, %v855_v37 }
 0x1d9   : > { %v913_v41 = vmax.f32 %v856_v38, 0.0 }
 0x1db   : > { %v937_v42 = vpack.c.bf16 %v913_v41, %v912_v40 }
 0x1dd   : > { %1057 = vmatmul.bf16.gmra.mxu2 %v937_v42 }
 0x1de   : > { %v858_v43 = vpop.f32.mrf.mxu1 }
 0x1df   : > { %v859_v47 = vadd.f32 %v2112_v6, %v858_v43 }
 0x1e1   : > { %v914_v52 = vmax.f32 %v859_v47, 0.0 }
 0x1e6   : > { %v860_v48 = vpop.f32.mrf.mxu1 }
 0x1e7   : > { %v861_v49 = vadd.f32 %v2112_v6, %v860_v48 }
 0x1e9   : > { %v915_v53 = vmax.f32 %v861_v49, 0.0 }
 0x1eb   : > { %v938_v54 = vpack.c.bf16 %v915_v53, %v914_v52 }
 0x1ed   : > { %1062 = vmatmul.bf16.gmra.mxu2 %v938_v54 }
 0x1ee   : > { %v863_v57 = vpop.f32.mrf.mxu1 }
 0x1ef   : > { %v864_v62 = vadd.f32 %v2112_v6, %v863_v57 }
 0x1f0   : > { %v1023_v58 = vpop.f32.mrf.mxu2 }
 0x1f1   : > { %v1024_v59 = vadd.f32 %v2149_v56, %v1023_v58  ;;  %v916_v3 = vmax.f32 %v864_v62, 0.0 }
 0x1f3   : > { %v1103_v61 = vmax.f32 %v1024_v59, 0.0 }
 0x1f5   : > { %v1139_v63 = vmul.f32 %v2155_v60, %v1103_v61 }
 0x1f6   : > { %v865_v0 = vpop.f32.mrf.mxu1 }
 0x1f7   : > { %v866_v1 = vadd.f32 %v2112_v6, %v865_v0  ;;  %1171 = vadd.xlane.f32.xlu0 %v1139_v63 }
 0x1f8   : > { %v1025_v2 = vpop.f32.mrf.mxu2 }
 0x1f9   : > { %v917_v4 = vmax.f32 %v866_v1, 0.0  ;;  %v1026_v5 = vadd.f32 %v2149_v56, %v1025_v2 }
 0x1fb   : > { %v1104_v7 = vmax.f32 %v1026_v5, 0.0  ;;  %v939_v8 = vpack.c.bf16 %v917_v4, %v916_v3 }
 0x1fc   : > { %v1083_v9 = vpop.f32.mrf.mxu3 }
 0x1fd   : > { %v1084_v30 = vadd.f32 %v2149_v56, %v1083_v9  ;;  %1067 = vmatmul.bf16.gmra.mxu2 %v939_v8  ;;  %v1140_v10 = vmul.f32 %v2155_v60, %v1104_v7 }
 0x1fe   : > { %v868_v11 = vpop.f32.mrf.mxu1 }
 0x1ff   : > { %v1127_v12 = vmax.f32 %v1084_v30, 0.0  ;;  %1173 = vadd.xlane.f32.xlu0 %v1140_v10  ;;  %v869_v18 = vadd.f32 %v2112_v6, %v868_v11 }
 0x200   : > { %v1028_v13 = vpop.f32.mrf.mxu2 }
 0x201   : > { %v1029_v14 = vadd.f32 %v2149_v56, %v1028_v13  ;;  %v1163_v16 = vmul.f32 %v2155_v60, %v1127_v12  ;;  %v918_v25 = vmax.f32 %v869_v18, 0.0 }
 0x203   : > { %v1105_v15 = vmax.f32 %v1029_v14, 0.0 }
 0x204   : > { %v1085_v17 = vpop.f32.mrf.mxu3 }
 0x205   : > { %v1086_v19 = vadd.f32 %v2149_v56, %v1085_v17  ;;  %v1141_v20 = vmul.f32 %v2155_v60, %v1105_v15 }
 0x206   : > { %v870_v21 = vpop.f32.mrf.mxu1 }
 0x207   : > { %v1128_v22 = vmax.f32 %v1086_v19, 0.0  ;;  %v871_v23 = vadd.f32 %v2112_v6, %v870_v21  ;;  %1175 = vadd.xlane.f32.xlu1 %v1141_v20  ;;  %1219 = vadd.xlane.f32.xlu0 %v1163_v16 }
 0x208   : > { %v1030_v24 = vpop.f32.mrf.mxu2 }
 0x209   : > { %v919_v26 = vmax.f32 %v871_v23, 0.0  ;;  %v1164_v28 = vmul.f32 %v2155_v60, %v1128_v22  ;;  %v1031_v31 = vadd.f32 %v2149_v56, %v1030_v24 }
 0x20b   : > { %v940_v27 = vpack.c.bf16 %v919_v26, %v918_v25  ;;  %v1106_v36 = vmax.f32 %v1031_v31, 0.0 }
 0x20c   : > { %v1088_v29 = vpop.f32.mrf.mxu3 }
 0x20d   : > { %v1089_v32 = vadd.f32 %v2149_v56, %v1088_v29  ;;  %1072 = vmatmul.bf16.gmra.mxu2 %v940_v27  ;;  %v1142_v42 = vmul.f32 %v2155_v60, %v1106_v36 }
 0x20e   : > { %v873_v33 = vpop.f32.mrf.mxu1 }
 0x20f   : > { %v1129_v34 = vmax.f32 %v1089_v32, 0.0  ;;  %1221 = vadd.xlane.f32.xlu1 %v1164_v28  ;;  %v874_v39 = vadd.f32 %v2112_v6, %v873_v33 }
 0x210   : > { %v1033_v35 = vpop.f32.mrf.mxu2 }
 0x211   : > { %v1034_v37 = vadd.f32 %v2149_v56, %v1033_v35  ;;  %v1165_v38 = vmul.f32 %v2155_v60, %v1129_v34  ;;  %v920_v47 = vmax.f32 %v874_v39, 0.0  ;;  %v2204_v35 = vstv %s1235_s24 }
 0x213   : > { %1223 = vadd.xlane.f32.xlu2 %v1165_v38  ;;  %v1107_v41 = vmax.f32 %v1034_v37, 0.0 }
 0x214   : > { %v1090_v40 = vpop.f32.mrf.mxu3 }
 0x215   : > { %v1091_v43 = vadd.f32 %v2149_v56, %v1090_v40  ;;  %v1143_v51 = vmul.f32 %v2155_v60, %v1107_v41 }
 0x216   : > { %v875_v44 = vpop.f32.mrf.mxu1 }
 0x217   : > { %v876_v45 = vadd.f32 %v2112_v6, %v875_v44  ;;  %1177 = vadd.xlane.f32.xlu1 %v1142_v42  ;;  %v1130_v46 = vmax.f32 %v1091_v43, 0.0 }
 0x218   : > { %v1035_v48 = vpop.f32.mrf.mxu2 }
 0x219   : > { %v921_v49 = vmax.f32 %v876_v45, 0.0  ;;  %v1036_v50 = vadd.f32 %v2149_v56, %v1035_v48  ;;  %v1166_v52 = vmul.f32 %v2155_v60, %v1130_v46 }
 0x21b   : > { %1179 = vadd.xlane.f32.xlu2 %v1143_v51  ;;  %v941_v53 = vpack.c.bf16 %v921_v49, %v920_v47  ;;  %1225 = vadd.xlane.f32.xlu0 %v1166_v52  ;;  %v1108_v55 = vmax.f32 %v1036_v50, 0.0 }
 0x21c   : > { %v1093_v54 = vpop.f32.mrf.mxu3 }
 0x21d   : > { %1077 = vmatmul.bf16.gmra.mxu2 %v941_v53  ;;  %v1094_v57 = vadd.f32 %v2149_v56, %v1093_v54  ;;  %v1144_v61 = vmul.f32 %v2155_v60, %v1108_v55 }
 0x21f   : > { %v1131_v6 = vmax.f32 %v1094_v57, 0.0 }
 0x220   : > { %v1038_v58 = vpop.f32.mrf.mxu2 }
 0x221   : > { %v1039_v59 = vadd.f32 %v2149_v56, %v1038_v58  ;;  %v1167_v62 = vmul.f32 %v2155_v60, %v1131_v6 }
 0x223   : > { %v1109_v63 = vmax.f32 %v1039_v59, 0.0  ;;  %1181 = vadd.xlane.f32.xlu2 %v1144_v61  ;;  %1227 = vadd.xlane.f32.xlu1 %v1167_v62 }
 0x225   : > { %v1145_v0 = vmul.f32 %v2155_v60, %v1109_v63 }
 0x227   : > { %1183 = vadd.xlane.f32.xlu0 %v1145_v0 }
 0x228   : > { %v1040_v1 = vpop.f32.mrf.mxu2 }
 0x229   : > { %v1041_v2 = vadd.f32 %v2149_v56, %v1040_v1 }
 0x22b   : > { %v1110_v3 = vmax.f32 %v1041_v2, 0.0 }
 0x22d   : > { %v1146_v4 = vmul.f32 %v2155_v60, %v1110_v3 }
 0x22f   : > { %1185 = vadd.xlane.f32.xlu1 %v1146_v4 }
 0x230   : > { %v1043_v5 = vpop.f32.mrf.mxu2 }
 0x231   : > { %v1044_v7 = vadd.f32 %v2149_v56, %v1043_v5 }
 0x233   : > { %v1111_v8 = vmax.f32 %v1044_v7, 0.0 }
 0x235   : > { %v1147_v9 = vmul.f32 %v2155_v60, %v1111_v8 }
 0x237   : > { %1187 = vadd.xlane.f32.xlu2 %v1147_v9 }
 0x238   : > { %v1045_v30 = vpop.f32.mrf.mxu2 }
 0x239   : > { %v1046_v10 = vadd.f32 %v2149_v56, %v1045_v30 }
 0x23b   : > { %v1112_v11 = vmax.f32 %v1046_v10, 0.0  ;;  %v1095_v10 = vpop.f32.mrf.mxu3 }
 0x23d   : > { %v1148_v12 = vmul.f32 %v2155_v60, %v1112_v11 }
 0x23f   : > { %1189 = vadd.xlane.f32.xlu0 %v1148_v12 }
 0x240   : > { %v1048_v13 = vpop.f32.mrf.mxu2 }
 0x241   : > { %v1049_v14 = vadd.f32 %v2149_v56, %v1048_v13 }
 0x243   : > { %v1113_v15 = vmax.f32 %v1049_v14, 0.0 }
 0x245   : > { %v1149_v16 = vmul.f32 %v2155_v60, %v1113_v15 }
 0x247   : > { %1191 = vadd.xlane.f32.xlu1 %v1149_v16 }
 0x248   : > { %v1050_v17 = vpop.f32.mrf.mxu2 }
 0x249   : > { %v1051_v18 = vadd.f32 %v2149_v56, %v1050_v17 }
 0x24b   : > { %v1114_v19 = vmax.f32 %v1051_v18, 0.0 }
 0x24d   : > { %v1150_v20 = vmul.f32 %v2155_v60, %v1114_v19  ;;  %v1098_v19 = vpop.f32.mrf.mxu3 }
 0x24f   : > { %1193 = vadd.xlane.f32.xlu2 %v1150_v20 }
 0x250   : > { %v1053_v21 = vpop.f32.mrf.mxu2 }
 0x251   : > { %v1054_v22 = vadd.f32 %v2149_v56, %v1053_v21 }
 0x253   : > { %v1115_v23 = vmax.f32 %v1054_v22, 0.0 }
 0x255   : > { %v1151_v24 = vmul.f32 %v2155_v60, %v1115_v23 }
 0x257   : > { %1195 = vadd.xlane.f32.xlu0 %v1151_v24 }
 0x258   : > { %v1055_v25 = vpop.f32.mrf.mxu2 }
 0x259   : > { %v1056_v26 = vadd.f32 %v2149_v56, %v1055_v25  ;;  %v1099_v25 = vadd.f32 %v2149_v56, %v1098_v19 }
 0x25b   : > { %v1116_v27 = vmax.f32 %v1056_v26, 0.0 }
 0x25d   : > { %v1152_v28 = vmul.f32 %v2155_v60, %v1116_v27 }
 0x25f   : > { %1197 = vadd.xlane.f32.xlu1 %v1152_v28  ;;  %v1133_v28 = vmax.f32 %v1099_v25, 0.0 }
 0x260   : > { %v1058_v29 = vpop.f32.mrf.mxu2 }
 0x261   : > { %v1059_v31 = vadd.f32 %v2149_v56, %v1058_v29 }
 0x263   : > { %v1117_v32 = vmax.f32 %v1059_v31, 0.0  ;;  %v1100_v31 = vpop.f32.mrf.mxu3 }
 0x265   : > { %v1153_v33 = vmul.f32 %v2155_v60, %v1117_v32 }
 0x267   : > { %1199 = vadd.xlane.f32.xlu2 %v1153_v33 }
 0x268   : > { %v1060_v34 = vpop.f32.mrf.mxu2 }
 0x269   : > { %v1061_v36 = vadd.f32 %v2149_v56, %v1060_v34 }
 0x26a   : > { %v1172_v37 = vpop.xlane.xlu0 %1171 }
 0x26b   : > { %v1118_v38 = vmax.f32 %v1061_v36, 0.0  ;;  %v1237_v39 = vadd.f32 %v2204_v35, %v1172_v37  ;;  %v1101_v36 = vadd.f32 %v2149_v56, %v1100_v31 }
 0x26d   : > { %1270 = vst.msk [vmem:[%s2210_s23] sm:$0xff] %vm1269_vm0, %v1237_v39  ;;  %v1154_v40 = vmul.f32 %v2155_v60, %v1118_v38  ;;  %v1169_v38 = vmul.f32 %v2155_v60, %v1133_v28 }
 0x26f   : > { %1201 = vadd.xlane.f32.xlu0 %v1154_v40  ;;  %v1134_v40 = vmax.f32 %v1101_v36, 0.0 }
 0x270   : > { %v1063_v41 = vpop.f32.mrf.mxu2 }
 0x271   : > { %v1064_v42 = vadd.f32 %v2149_v56, %v1063_v41 }
 0x272   : > { %v1174_v43 = vpop.xlane.xlu0 %1173 }
 0x273   : > { %v1119_v44 = vmax.f32 %v1064_v42, 0.0  ;;  %v1238_v45 = vadd.f32 %v2204_v35, %v1174_v43 }
 0x275   : > { %1271 = vst.msk [vmem:[%s2210_s23 + $0x8] sm:$0xff] %vm1269_vm0, %v1238_v45  ;;  %v1155_v46 = vmul.f32 %v2155_v60, %v1119_v44  ;;  %v1096_v45 = vadd.f32 %v2149_v56, %v1095_v10 }
 0x277   : > { %1203 = vadd.xlane.f32.xlu1 %v1155_v46 }
 0x278   : > { %v1065_v47 = vpop.f32.mrf.mxu2 }
 0x279   : > { %v1066_v48 = vadd.f32 %v2149_v56, %v1065_v47  ;;  %v1170_v47 = vmul.f32 %v2155_v60, %v1134_v40 }
 0x27a   : > { %v1176_v49 = vpop.xlane.xlu1 %1175  ;;  %v1220_v50 = vpop.xlane.xlu0 %1219 }
 0x27b   : > { %v1120_v51 = vmax.f32 %v1066_v48, 0.0  ;;  %v1239_v52 = vadd.f32 %v2204_v35, %v1176_v49  ;;  %v1261_v53 = vadd.f32 %v2204_v35, %v1220_v50  ;;  %v1132_v48 = vmax.f32 %v1096_v45, 0.0 }
 0x27d   : > { %1272 = vst.msk [vmem:[%s2210_s23 + $0x10] sm:$0xff] %vm1269_vm0, %v1239_v52  ;;  %v1156_v54 = vmul.f32 %v2155_v60, %v1120_v51  ;;  %v1168_v51 = vmul.f32 %v2155_v60, %v1132_v48 }
 0x27e   : > { %1294 = vst.msk [vmem:[%s2210_s23 + $0xc0] sm:$0xff] %vm1269_vm0, %v1261_v53 }
 0x27f   : > { %1205 = vadd.xlane.f32.xlu2 %v1156_v54 }
 0x280   : > { %v1068_v55 = vpop.f32.mrf.mxu2 }
 0x281   : > { %v1069_v57 = vadd.f32 %v2149_v56, %v1068_v55 }
 0x282   : > { %v1222_v6 = vpop.xlane.xlu1 %1221 }
 0x283   : > { %v1121_v58 = vmax.f32 %v1069_v57, 0.0  ;;  %v1262_v59 = vadd.f32 %v2204_v35, %v1222_v6 }
 0x285   : > { %1295 = vst.msk [vmem:[%s2210_s23 + $0xc8] sm:$0xff] %vm1269_vm0, %v1262_v59  ;;  %v1157_v61 = vmul.f32 %v2155_v60, %v1121_v58 }
 0x286   : > { %v1224_v62 = vpop.xlane.xlu2 %1223 }
 0x287   : > { %v1263_v63 = vadd.f32 %v2204_v35, %v1224_v62  ;;  %1207 = vadd.xlane.f32.xlu0 %v1157_v61 }
 0x288   : > { %v1070_v0 = vpop.f32.mrf.mxu2 }
 0x289   : > { %1296 = vst.msk [vmem:[%s2210_s23 + $0xd0] sm:$0xff] %vm1269_vm0, %v1263_v63  ;;  %v1071_v1 = vadd.f32 %v2149_v56, %v1070_v0 }
 0x28a   : > { %v1178_v2 = vpop.xlane.xlu1 %1177 }
 0x28b   : > { %v1122_v3 = vmax.f32 %v1071_v1, 0.0  ;;  %v1240_v4 = vadd.f32 %v2204_v35, %v1178_v2 }
 0x28d   : > { %1273 = vst.msk [vmem:[%s2210_s23 + $0x18] sm:$0xff] %vm1269_vm0, %v1240_v4  ;;  %v1158_v5 = vmul.f32 %v2155_v60, %v1122_v3 }
 0x28e   : > { %v1180_v7 = vpop.xlane.xlu2 %1179  ;;  %v1226_v8 = vpop.xlane.xlu0 %1225 }
 0x28f   : > { %v1241_v9 = vadd.f32 %v2204_v35, %v1180_v7  ;;  %1209 = vadd.xlane.f32.xlu1 %v1158_v5  ;;  %v1264_v30 = vadd.f32 %v2204_v35, %v1226_v8 }
 0x290   : > { %v1073_v11 = vpop.f32.mrf.mxu2 }
 0x291   : > { %1274 = vst.msk [vmem:[%s2210_s23 + $0x20] sm:$0xff] %vm1269_vm0, %v1241_v9  ;;  %v1074_v12 = vadd.f32 %v2149_v56, %v1073_v11 }
 0x292   : > { %1297 = vst.msk [vmem:[%s2210_s23 + $0xd8] sm:$0xff] %vm1269_vm0, %v1264_v30 }
 0x293   : > { %v1123_v13 = vmax.f32 %v1074_v12, 0.0 }
 0x295   : > { %v1159_v14 = vmul.f32 %v2155_v60, %v1123_v13 }
 0x296   : > { %v1182_v15 = vpop.xlane.xlu2 %1181  ;;  %v1228_v16 = vpop.xlane.xlu1 %1227 }
 0x297   : > { %v1242_v17 = vadd.f32 %v2204_v35, %v1182_v15  ;;  %1211 = vadd.xlane.f32.xlu2 %v1159_v14  ;;  %v1265_v18 = vadd.f32 %v2204_v35, %v1228_v16 }
 0x298   : > { %v1075_v20 = vpop.f32.mrf.mxu2 }
 0x299   : > { %1275 = vst.msk [vmem:[%s2210_s23 + $0x28] sm:$0xff] %vm1269_vm0, %v1242_v17  ;;  %v1076_v21 = vadd.f32 %v2149_v56, %v1075_v20 }
 0x29a   : > { %1298 = vst.msk [vmem:[%s2210_s23 + $0xe0] sm:$0xff] %vm1269_vm0, %v1265_v18  ;;  %v1184_v22 = vpop.xlane.xlu0 %1183 }
 0x29b   : > { %v1124_v23 = vmax.f32 %v1076_v21, 0.0  ;;  %v1243_v24 = vadd.f32 %v2204_v35, %v1184_v22 }
 0x29d   : > { %1276 = vst.msk [vmem:[%s2210_s23 + $0x30] sm:$0xff] %vm1269_vm0, %v1243_v24  ;;  %v1160_v26 = vmul.f32 %v2155_v60, %v1124_v23 }
 0x29f   : > { %1213 = vadd.xlane.f32.xlu0 %v1160_v26 }
 0x2a0   : > { %v1078_v27 = vpop.f32.mrf.mxu2 }
 0x2a1   : > { %v1079_v29 = vadd.f32 %v2149_v56, %v1078_v27 }
 0x2a2   : > { %v1186_v32 = vpop.xlane.xlu1 %1185 }
 0x2a3   : > { %v1125_v33 = vmax.f32 %v1079_v29, 0.0  ;;  %v1244_v34 = vadd.f32 %v2204_v35, %v1186_v32 }
 0x2a5   : > { %1277 = vst.msk [vmem:[%s2210_s23 + $0x38] sm:$0xff] %vm1269_vm0, %v1244_v34  ;;  %v1161_v37 = vmul.f32 %v2155_v60, %v1125_v33 }
 0x2a7   : > { %1215 = vadd.xlane.f32.xlu1 %v1161_v37  ;;  %1231 = vadd.xlane.f32.xlu0 %v1169_v38 }
 0x2a8   : > { %v1080_v39 = vpop.f32.mrf.mxu2 }
 0x2a9   : > { %v1081_v41 = vadd.f32 %v2149_v56, %v1080_v39 }
 0x2aa   : > { %v1188_v42 = vpop.xlane.xlu2 %1187 }
 0x2ab   : > { %v1126_v43 = vmax.f32 %v1081_v41, 0.0  ;;  %v1245_v44 = vadd.f32 %v2204_v35, %v1188_v42 }
 0x2ad   : > { %1278 = vst.msk [vmem:[%s2210_s23 + $0x40] sm:$0xff] %vm1269_vm0, %v1245_v44  ;;  %v1162_v46 = vmul.f32 %v2155_v60, %v1126_v43 }
 0x2af   : > { %1217 = vadd.xlane.f32.xlu2 %v1162_v46  ;;  %1233 = vadd.xlane.f32.xlu1 %v1170_v47 }
 0x2b2   : > { %v1190_v49 = vpop.xlane.xlu0 %1189 }
 0x2b3   : > { %v1246_v50 = vadd.f32 %v2204_v35, %v1190_v49 }
 0x2b5   : > { %1279 = vst.msk [vmem:[%s2210_s23 + $0x48] sm:$0xff] %vm1269_vm0, %v1246_v50 }
 0x2b7   : > { %1229 = vadd.xlane.f32.xlu2 %v1168_v51 }
 0x2ba   : > { %v1192_v56 = vpop.xlane.xlu1 %1191 }
 0x2bb   : > { %v1247_v52 = vadd.f32 %v2204_v35, %v1192_v56 }
 0x2bd   : > { %1280 = vst.msk [vmem:[%s2210_s23 + $0x50] sm:$0xff] %vm1269_vm0, %v1247_v52 }
 0x2c2   : > { %v1194_v53 = vpop.xlane.xlu2 %1193 }
 0x2c3   : > { %v1248_v54 = vadd.f32 %v2204_v35, %v1194_v53 }
 0x2c5   : > { %1281 = vst.msk [vmem:[%s2210_s23 + $0x58] sm:$0xff] %vm1269_vm0, %v1248_v54 }
 0x2ca   : > { %v1196_v55 = vpop.xlane.xlu0 %1195 }
 0x2cb   : > { %v1249_v57 = vadd.f32 %v2204_v35, %v1196_v55 }
 0x2cd   : > { %1282 = vst.msk [vmem:[%s2210_s23 + $0x60] sm:$0xff] %vm1269_vm0, %v1249_v57 }
 0x2d2   : > { %v1198_v60 = vpop.xlane.xlu1 %1197 }
 0x2d3   : > { %v1250_v6 = vadd.f32 %v2204_v35, %v1198_v60 }
 0x2d5   : > { %1283 = vst.msk [vmem:[%s2210_s23 + $0x68] sm:$0xff] %vm1269_vm0, %v1250_v6 }
 0x2da   : > { %v1200_v58 = vpop.xlane.xlu2 %1199 }
 0x2db   : > { %v1251_v59 = vadd.f32 %v2204_v35, %v1200_v58 }
 0x2dd   : > { %1284 = vst.msk [vmem:[%s2210_s23 + $0x70] sm:$0xff] %vm1269_vm0, %v1251_v59 }
 0x2e2   : > { %v1202_v61 = vpop.xlane.xlu0 %1201 }
 0x2e3   : > { %v1252_v62 = vadd.f32 %v2204_v35, %v1202_v61 }
 0x2e5   : > { %1285 = vst.msk [vmem:[%s2210_s23 + $0x78] sm:$0xff] %vm1269_vm0, %v1252_v62 }
 0x2ea   : > { %v1204_v63 = vpop.xlane.xlu1 %1203 }
 0x2eb   : > { %v1253_v0 = vadd.f32 %v2204_v35, %v1204_v63 }
 0x2ed   : > { %1286 = vst.msk [vmem:[%s2210_s23 + $0x80] sm:$0xff] %vm1269_vm0, %v1253_v0 }
 0x2f2   : > { %v1206_v1 = vpop.xlane.xlu2 %1205 }
 0x2f3   : > { %v1254_v2 = vadd.f32 %v2204_v35, %v1206_v1 }
 0x2f5   : > { %1287 = vst.msk [vmem:[%s2210_s23 + $0x88] sm:$0xff] %vm1269_vm0, %v1254_v2 }
 0x2fa   : > { %v1208_v3 = vpop.xlane.xlu0 %1207 }
 0x2fb   : > { %v1255_v4 = vadd.f32 %v2204_v35, %v1208_v3 }
 0x2fd   : > { %1288 = vst.msk [vmem:[%s2210_s23 + $0x90] sm:$0xff] %vm1269_vm0, %v1255_v4 }
 0x302   : > { %v1210_v5 = vpop.xlane.xlu1 %1209 }
 0x303   : > { %v1256_v7 = vadd.f32 %v2204_v35, %v1210_v5 }
 0x305   : > { %1289 = vst.msk [vmem:[%s2210_s23 + $0x98] sm:$0xff] %vm1269_vm0, %v1256_v7 }
 0x30a   : > { %v1212_v8 = vpop.xlane.xlu2 %1211 }
 0x30b   : > { %v1257_v9 = vadd.f32 %v2204_v35, %v1212_v8 }
 0x30d   : > { %1290 = vst.msk [vmem:[%s2210_s23 + $0xa0] sm:$0xff] %vm1269_vm0, %v1257_v9 }
 0x312   : > { %v1214_v30 = vpop.xlane.xlu0 %1213 }
 0x313   : > { %v1258_v10 = vadd.f32 %v2204_v35, %v1214_v30 }
 0x315   : > { %1291 = vst.msk [vmem:[%s2210_s23 + $0xa8] sm:$0xff] %vm1269_vm0, %v1258_v10 }
 0x31a   : > { %v1216_v11 = vpop.xlane.xlu1 %1215  ;;  %v1232_v12 = vpop.xlane.xlu0 %1231 }
 0x31b   : > { %v1259_v13 = vadd.f32 %v2204_v35, %v1216_v11  ;;  %v1267_v14 = vadd.f32 %v2204_v35, %v1232_v12 }
 0x31d   : > { %1292 = vst.msk [vmem:[%s2210_s23 + $0xb0] sm:$0xff] %vm1269_vm0, %v1259_v13 }
 0x31e   : > { %1300 = vst.msk [vmem:[%s2210_s23 + $0xf0] sm:$0xff] %vm1269_vm0, %v1267_v14 }
 0x322   : > { %v1218_v15 = vpop.xlane.xlu2 %1217  ;;  %v1234_v16 = vpop.xlane.xlu1 %1233 }
 0x323   : > { %v1260_v17 = vadd.f32 %v2204_v35, %v1218_v15  ;;  %v1268_v18 = vadd.f32 %v2204_v35, %v1234_v16 }
 0x325   : > { %1293 = vst.msk [vmem:[%s2210_s23 + $0xb8] sm:$0xff] %vm1269_vm0, %v1260_v17 }
 0x326   : > { %1301 = vst.msk [vmem:[%s2210_s23 + $0xf8] sm:$0xff] %vm1269_vm0, %v1268_v18 }
 0x32a   : > { %v1230_v19 = vpop.xlane.xlu2 %1229 }
 0x32b   : > { %v1266_v20 = vadd.f32 %v2204_v35, %v1230_v19 }
 0x32d   : > { %1299 = vst.msk [vmem:[%s2210_s23 + $0xe8] sm:$0xff] %vm1269_vm0, %v1266_v20 }
 0x32e PF: > { %p22_p4 = scmp.ge.s32.totalorder %s2006_s21, 4   ;;  %s2363_s11 = smov %s1872_s12 }
 0x32f   : > { %s2364_s12 = smov %s1876_s13  ;;  %s2365_s13 = smov %s2021_s25 }
 0x330   : > { %s2366_s14 = smov %s2006_s21  ;;  %24 = sbr.rel (!%p22_p4) target bundleno = 8 (0x8), region = 108 }
 0x335   :  { %1324 = vsyncpa [#allocation4], 1 }
 0x336   :  { %1326 = vsyncpa [#allocation4 + $0x1], 1 }
 0x337   :  { %1327 = vsyncpa [#allocation6], 1 }
 0x338   :  { %1328 = vsyncpa [#allocation9], 1 }

</bundles_post_ra>
